<compile_context>
chip_gen: v7x
topology: tpu7x:2x2x1
jax: 0.10.0
libtpu: 0.0.40
codegen_flags: <defaults>
</compile_context>

<pallas_src>
import jax
import jax.numpy as jnp
from jax.experimental import pallas as pl
from jax.experimental.pallas import tpu as pltpu


def _round_up(x, m):
    return (x + m - 1) // m * m


# ---------------- fused kernel: conv(as matmul)+ReLU+avgpool(matmul)+fc ------
def _fused_kernel(patches_ref, wc_ref, bc_ref, pool_ref, wf_ref, bf_ref,
                  feat_ref, logits_ref):
    # patches_ref: (BLK_B*HW, Kp) bf16    wc_ref: (Kp, Fp) bf16
    # bc_ref:      (1, Fp) f32            pool_ref: (BLK_B, BLK_B*HW) f32
    # wf_ref:      (Fp, Np) f32           bf_ref: (1, Np) f32
    # feat_ref:    (BLK_B, Fp) f32        logits_ref: (BLK_B, Np) f32
    acc = jnp.dot(patches_ref[...], wc_ref[...],
                  preferred_element_type=jnp.float32)          # MXU, f32 acc
    acc = jnp.maximum(acc + bc_ref[...], 0.0)                  # bias + ReLU
    # Global average pool as a block-diagonal matmul (weights are exact 1/HW).
    feat = jnp.dot(pool_ref[...], acc,
                   preferred_element_type=jnp.float32)         # [BLK_B, Fp]
    feat_ref[...] = feat
    # Fused fc epilogue; tiny, kept f32 for accuracy.
    logits_ref[...] = (
        jnp.dot(feat, wf_ref[...], preferred_element_type=jnp.float32)
        + bf_ref[...]
    )


# ---------------- wrapper (layout plumbing in plain JAX) ---------------------
@jax.jit
def model_wrapper_forward(x_nchw, conv_w, conv_b, fc_w, fc_b):
    """Returns (features, logits) — same tuple as ModelWrapper.forward."""
    B, C, H, W = x_nchw.shape
    kH = kW = 3
    HW = H * W
    K = kH * kW * C
    F_out = conv_w.shape[0]
    N = fc_w.shape[1]

    # Zero-padded, lane/sublane-friendly sizes (padding is exact: contributes 0).
    Kp = _round_up(K, 16)        # contraction dim, bf16 sublane packing
    Fp = _round_up(F_out, 128)   # lane-dense feature slab
    Np = _round_up(N, 128)       # lane-dense logits slab

    # Batch tiling: merge up to 8 batch rows into one grid step / one matmul.
    if B <= 8:
        BLK_B, BP = B, B
    else:
        BLK_B, BP = 8, _round_up(B, 8)

    # NCHW -> NHWC, pad=1, im2col to [B*HW, 9C].
    # TODO(synk): for realistic H/W, move im2col inside the kernel (9 shifted
    # matmuls over a pl.ANY image ref) to avoid the 9x HBM expansion of patches.
    x = jnp.transpose(x_nchw, (0, 2, 3, 1))                       # [B,H,W,C]
    xp = jnp.pad(x, ((0, 0), (1, 1), (1, 1), (0, 0)))
    patches = jnp.concatenate(
        [xp[:, i:i + H, j:j + W, :] for i in range(kH) for j in range(kW)],
        axis=-1,
    ).reshape(B * HW, K)
    patches = jnp.pad(patches, ((0, (BP - B) * HW), (0, Kp - K)))
    patches = patches.astype(jnp.bfloat16)                        # [BP*HW, Kp]

    # conv weight [F,C,kh,kw] -> [kh,kw,C,F] -> [K,F] (matches patch order),
    # zero-padded to [Kp, Fp], bf16 for the MXU.
    w_conv = jnp.transpose(conv_w, (2, 3, 1, 0)).reshape(K, F_out)
    w_conv = jnp.pad(w_conv, ((0, Kp - K), (0, Fp - F_out))).astype(jnp.bfloat16)
    b_conv = jnp.pad(conv_b.reshape(1, F_out).astype(jnp.float32),
                     ((0, 0), (0, Fp - F_out)))

    # Block-diagonal pooling matrix: pool[b, b*HW:(b+1)*HW] = 1/HW.
    pool = jnp.kron(jnp.eye(BLK_B, dtype=jnp.float32),
                    jnp.full((1, HW), 1.0 / HW, dtype=jnp.float32))  # [BLK_B, BLK_B*HW]

    # fc params padded to lane-dense [Fp, Np]; kept f32 (epilogue is tiny).
    w_fc = jnp.pad(fc_w.astype(jnp.float32), ((0, Fp - F_out), (0, Np - N)))
    b_fc = jnp.pad(fc_b.reshape(1, N).astype(jnp.float32),
                   ((0, 0), (0, Np - N)))

    n_steps = BP // BLK_B
    flops = (2 * BP * HW * Kp * Fp          # conv matmul
             + 2 * BP * BLK_B * HW * Fp     # pooling matmul
             + 2 * BP * Fp * Np)            # fc
    bytes_accessed = (patches.size * 2 + w_conv.size * 2
                      + (b_conv.size + pool.size + w_fc.size + b_fc.size) * 4
                      + BP * (Fp + Np) * 4)

    feat_p, logits_p = pl.pallas_call(
        _fused_kernel,
        out_shape=(jax.ShapeDtypeStruct((BP, Fp), jnp.float32),
                   jax.ShapeDtypeStruct((BP, Np), jnp.float32)),
        grid=(n_steps,),
        in_specs=[
            pl.BlockSpec((BLK_B * HW, Kp), lambda g: (g, 0)),
            pl.BlockSpec((Kp, Fp), lambda g: (0, 0)),
            pl.BlockSpec((1, Fp), lambda g: (0, 0)),
            pl.BlockSpec((BLK_B, BLK_B * HW), lambda g: (0, 0)),
            pl.BlockSpec((Fp, Np), lambda g: (0, 0)),
            pl.BlockSpec((1, Np), lambda g: (0, 0)),
        ],
        out_specs=(
            pl.BlockSpec((BLK_B, Fp), lambda g: (g, 0)),
            pl.BlockSpec((BLK_B, Np), lambda g: (g, 0)),
        ),
        compiler_params=pltpu.CompilerParams(
            dimension_semantics=("parallel",)),   # v7x dual-TC split over batch blocks
        cost_estimate=pl.CostEstimate(
            flops=flops, transcendentals=0, bytes_accessed=bytes_accessed),
    )(patches, w_conv, b_conv, pool, w_fc, b_fc)

    return feat_p[:B, :F_out], logits_p[:B, :N]


# ---------------- reference (pure JAX, f32) ----------------------------------
def _reference(x_nchw, conv_w, conv_b, fc_w, fc_b):
    y = jax.lax.conv_general_dilated(
        x_nchw, conv_w, window_strides=(1, 1), padding="SAME",
        dimension_numbers=("NCHW", "OIHW", "NCHW"))
    y = jnp.maximum(y + conv_b[None, :, None, None], 0.0)
    feats = jnp.mean(y, axis=(2, 3))
    logits = feats @ fc_w + fc_b
    return feats, logits


if __name__ == "__main__":
    B, C, H, W = 2, 4, 16, 16
    out_features, n_classes = 32, 10

    key = jax.random.PRNGKey(0)
    k_x, k_cw, k_cb, k_fw, k_fb = jax.random.split(key, 5)

    x = jax.random.normal(k_x, (B, C, H, W), dtype=jnp.float32)
    conv_w = 0.1 * jax.random.normal(k_cw, (out_features, C, 3, 3), jnp.float32)
    conv_b = 0.1 * jax.random.normal(k_cb, (out_features,), jnp.float32)
    fc_w = 0.1 * jax.random.normal(k_fw, (out_features, n_classes), jnp.float32)
    fc_b = 0.1 * jax.random.normal(k_fb, (n_classes,), jnp.float32)

    feats, logits = model_wrapper_forward(x, conv_w, conv_b, fc_w, fc_b)
    jax.block_until_ready((feats, logits))

    ref_feats, ref_logits = _reference(x, conv_w, conv_b, fc_w, fc_b)
    assert feats.shape == (B, out_features) and logits.shape == (B, n_classes)
    # bf16 conv inputs with f32 accumulation -> relaxed (but still tight) tol.
    assert jnp.allclose(feats, ref_feats, atol=2e-2, rtol=2e-2)
    assert jnp.allclose(logits, ref_logits, atol=2e-2, rtol=2e-2)

    print("KERNEL_OK")
</pallas_src>

<mosaic_0001>
module attributes {stable_mosaic.version = 11 : i64} {
  func.func @_fused_kernel(%arg0: i32, %arg1: memref<512x48xbf16, #tpu.memory_space<vmem>>, %arg2: memref<48x128xbf16, #tpu.memory_space<vmem>>, %arg3: memref<1x128xf32, #tpu.memory_space<vmem>>, %arg4: memref<2x512xf32, #tpu.memory_space<vmem>>, %arg5: memref<128x128xf32, #tpu.memory_space<vmem>>, %arg6: memref<1x128xf32, #tpu.memory_space<vmem>>, %arg7: memref<2x128xf32, #tpu.memory_space<vmem>>, %arg8: memref<2x128xf32, #tpu.memory_space<vmem>>) attributes {dimension_semantics = [#tpu.dimension_semantics<parallel>], iteration_bounds = array<i64: 1>, scalar_prefetch = 0 : i64, scratch_operands = 0 : i64, tpu.core_type = #tpu.core_type<tc>, window_params = [{transform_indices = @transform_0, window_bounds = array<i64: 512, 48>}, {pipeline_mode = #tpu.pipeline_mode<synchronous>, transform_indices = @transform_1, window_bounds = array<i64: 48, 128>}, {pipeline_mode = #tpu.pipeline_mode<synchronous>, transform_indices = @transform_2, window_bounds = array<i64: 1, 128>}, {pipeline_mode = #tpu.pipeline_mode<synchronous>, transform_indices = @transform_3, window_bounds = array<i64: 2, 512>}, {pipeline_mode = #tpu.pipeline_mode<synchronous>, transform_indices = @transform_4, window_bounds = array<i64: 128, 128>}, {pipeline_mode = #tpu.pipeline_mode<synchronous>, transform_indices = @transform_5, window_bounds = array<i64: 1, 128>}, {transform_indices = @transform_6, window_bounds = array<i64: 2, 128>}, {transform_indices = @transform_7, window_bounds = array<i64: 2, 128>}]} {
    %c0 = arith.constant 0 : index
    %c0_0 = arith.constant 0 : index
    %0 = vector.load %arg1[%c0, %c0_0] : memref<512x48xbf16, #tpu.memory_space<vmem>>, vector<512x48xbf16>
    %c0_1 = arith.constant 0 : index
    %c0_2 = arith.constant 0 : index
    %1 = vector.load %arg2[%c0_1, %c0_2] : memref<48x128xbf16, #tpu.memory_space<vmem>>, vector<48x128xbf16>
    %cst = arith.constant dense<0.000000e+00> : vector<512x128xf32>
    %2 = tpu.matmul %0, %1, %cst {dimension_numbers = #tpu.dot_dimension_numbers<[1], [0], [0], [1], [0, 0, 1, 1], [], []>} : vector<512x48xbf16>, vector<48x128xbf16>, vector<512x128xf32> -> vector<512x128xf32>
    %c0_3 = arith.constant 0 : index
    %c0_4 = arith.constant 0 : index
    %3 = vector.load %arg3[%c0_3, %c0_4] : memref<1x128xf32, #tpu.memory_space<vmem>>, vector<1x128xf32>
    %4 = vector.broadcast %3 : vector<1x128xf32> to vector<512x128xf32>
    %5 = arith.addf %2, %4 : vector<512x128xf32>
    %cst_5 = arith.constant 0.000000e+00 : f32
    %6 = vector.broadcast %cst_5 : f32 to vector<512x128xf32>
    %7 = arith.maximumf %5, %6 : vector<512x128xf32>
    %c0_6 = arith.constant 0 : index
    %c0_7 = arith.constant 0 : index
    %8 = vector.load %arg4[%c0_6, %c0_7] : memref<2x512xf32, #tpu.memory_space<vmem>>, vector<2x512xf32>
    %cst_8 = arith.constant dense<0.000000e+00> : vector<2x128xf32>
    %9 = tpu.matmul %8, %7, %cst_8 {dimension_numbers = #tpu.dot_dimension_numbers<[1], [0], [0], [1], [0, 0, 1, 1], [], []>} : vector<2x512xf32>, vector<512x128xf32>, vector<2x128xf32> -> vector<2x128xf32>
    %c0_9 = arith.constant 0 : index
    %c0_10 = arith.constant 0 : index
    %10 = vector.load %arg7[%c0_9, %c0_10] : memref<2x128xf32, #tpu.memory_space<vmem>>, vector<2x128xf32>
    tpu.vector_store %arg7[%c0_9, %c0_10], %9 {strides = array<i32>} : memref<2x128xf32, #tpu.memory_space<vmem>>, vector<2x128xf32>,
    %c0_11 = arith.constant 0 : index
    %c0_12 = arith.constant 0 : index
    %11 = vector.load %arg5[%c0_11, %c0_12] : memref<128x128xf32, #tpu.memory_space<vmem>>, vector<128x128xf32>
    %cst_13 = arith.constant dense<0.000000e+00> : vector<2x128xf32>
    %12 = tpu.matmul %9, %11, %cst_13 {dimension_numbers = #tpu.dot_dimension_numbers<[1], [0], [0], [1], [0, 0, 1, 1], [], []>} : vector<2x128xf32>, vector<128x128xf32>, vector<2x128xf32> -> vector<2x128xf32>
    %c0_14 = arith.constant 0 : index
    %c0_15 = arith.constant 0 : index
    %13 = vector.load %arg6[%c0_14, %c0_15] : memref<1x128xf32, #tpu.memory_space<vmem>>, vector<1x128xf32>
    %14 = vector.broadcast %13 : vector<1x128xf32> to vector<2x128xf32>
    %15 = arith.addf %12, %14 : vector<2x128xf32>
    %c0_16 = arith.constant 0 : index
    %c0_17 = arith.constant 0 : index
    %16 = vector.load %arg8[%c0_16, %c0_17] : memref<2x128xf32, #tpu.memory_space<vmem>>, vector<2x128xf32>
    tpu.vector_store %arg8[%c0_16, %c0_17], %15 {strides = array<i32>} : memref<2x128xf32, #tpu.memory_space<vmem>>, vector<2x128xf32>,
    return
  }
  func.func @transform_0(%arg0: i32) -> (i32, i32) {
    %c0_i32 = arith.constant 0 : i32
    %c0_i32_0 = arith.constant 0 : i32
    return %arg0, %c0_i32 : i32, i32
  }
  func.func @transform_1(%arg0: i32) -> (i32, i32) {
    %c0_i32 = arith.constant 0 : i32
    %c0_i32_0 = arith.constant 0 : i32
    %c0_i32_1 = arith.constant 0 : i32
    return %c0_i32, %c0_i32_0 : i32, i32
  }
  func.func @transform_2(%arg0: i32) -> (i32, i32) {
    %c0_i32 = arith.constant 0 : i32
    %c0_i32_0 = arith.constant 0 : i32
    %c0_i32_1 = arith.constant 0 : i32
    return %c0_i32, %c0_i32_0 : i32, i32
  }
  func.func @transform_3(%arg0: i32) -> (i32, i32) {
    %c0_i32 = arith.constant 0 : i32
    %c0_i32_0 = arith.constant 0 : i32
    %c0_i32_1 = arith.constant 0 : i32
    return %c0_i32, %c0_i32_0 : i32, i32
  }
  func.func @transform_4(%arg0: i32) -> (i32, i32) {
    %c0_i32 = arith.constant 0 : i32
    %c0_i32_0 = arith.constant 0 : i32
    %c0_i32_1 = arith.constant 0 : i32
    return %c0_i32, %c0_i32_0 : i32, i32
  }
  func.func @transform_5(%arg0: i32) -> (i32, i32) {
    %c0_i32 = arith.constant 0 : i32
    %c0_i32_0 = arith.constant 0 : i32
    %c0_i32_1 = arith.constant 0 : i32
    return %c0_i32, %c0_i32_0 : i32, i32
  }
  func.func @transform_6(%arg0: i32) -> (i32, i32) {
    %c0_i32 = arith.constant 0 : i32
    %c0_i32_0 = arith.constant 0 : i32
    return %arg0, %c0_i32 : i32, i32
  }
  func.func @transform_7(%arg0: i32) -> (i32, i32) {
    %c0_i32 = arith.constant 0 : i32
    %c0_i32_0 = arith.constant 0 : i32
    return %arg0, %c0_i32 : i32, i32
  }
}

</mosaic_0001>

<bundles_post_ra>
// kernel: model_wrapper_forward.1
= control target key start
LH: loop header
LB: loop body
LE: loop exit
PB: predicated region body
PF: predicated region fallthrough
CT: control target
= control target key end

     0   :  { %13 = vsyncpa [#allocation3], 0  ;;  %vm283_vm0 = vcmask 392192   ;;  %s1881_s0 = inlined_call_operand.vmem [shape: bf16[512,48], index: 0, kind: input, shape index: {}]   ;;  %s1882_s1 = inlined_call_operand.vmem [shape: bf16[48,128], index: 1, kind: input, shape index: {}]   ;;  %s1883_s2 = inlined_call_operand.vmem [shape: f32[1,128], index: 2, kind: input, shape index: {}]   ;;  %s1884_s3 = inlined_call_operand.vmem [shape: f32[2,512], index: 3, kind: input, shape index: {}]   ;;  %s1885_s4 = inlined_call_operand.vmem [shape: f32[128,128], index: 4, kind: input, shape index: {}]   ;;  %s1886_s5 = inlined_call_operand.vmem [shape: f32[1,128], index: 5, kind: input, shape index: {}]   ;;  %s1887_s6 = inlined_call_operand.hbm [shape: f32[2,128], index: 6, kind: output, shape index: {0}]   ;;  %s1888_s7 = inlined_call_operand.hbm [shape: f32[2,128], index: 7, kind: output, shape index: {1}]  }
   0x1   :  { %v1409_v0 = vld [vmem:[%s1882_s1] sm:$0xff]   ;;  %v1410_v1 = vld [vmem:[%s1882_s1 + $0x8] sm:$0xff]   ;;  %v1411_v3 = vld [vmem:[%s1882_s1 + $0x10] sm:$0xff]  }
   0x2   :  { %1210 = vmatprep.subr.bf16.mxu0 %v1409_v0  ;;  %v1412_v2 = vld [vmem:[%s1881_s0] sm:$0xff]   ;;  %v1413_v4 = vld [vmem:[%s1881_s0 + $0x8] sm:$0xff]   ;;  %v1414_v5 = vld [vmem:[%s1881_s0 + $0x10] sm:$0xff]  }
   0x3   :  { %1211 = vmatpush3.bf16.msra.mxu0 %v1409_v0  ;;  %1216 = vmatprep.mubr.msk.bf16.mxu0 %vm283_vm0, %v1412_v2  ;;  %v1415_v6 = vld [vmem:[%s1881_s0 + $0x18] sm:$0xff]   ;;  %v1416_v7 = vld [vmem:[%s1881_s0 + $0x20] sm:$0xff]   ;;  %v1417_v8 = vld [vmem:[%s1881_s0 + $0x28] sm:$0xff]  }
   0x4   :  { %1212 = vmatprep.subr.bf16.mxu0 %v1410_v1  ;;  %v1418_v9 = vld [vmem:[%s1881_s0 + $0x30] sm:$0xff]   ;;  %v1419_v10 = vld [vmem:[%s1881_s0 + $0x38] sm:$0xff]   ;;  %v1420_v11 = vld [vmem:[%s1881_s0 + $0x40] sm:$0xff]  }
   0x7   :  { %1213 = vmatpush3.bf16.msra.mxu0 %v1410_v1 }
   0x8   :  { %1214 = vmatprep.subr.bf16.mxu0 %v1411_v3 }
   0xb   :  { %1215 = vmatpush3.bf16.msra.mxu0 %v1411_v3 }
   0xe   :  { %1217 = vmatmul.mubr.msk.bf16.vlgmr.msra.gmra.mrb[0].mxu0 %vm283_vm0, %v1413_v4 }
   0xf   :  { %1220 = vmatprep.mubr.msk.bf16.mxu0 %vm283_vm0, %v1414_v5 }
  0x16   :  { %1221 = vmatmul.mubr.msk.bf16.gmra.mrb[4].mxu0 %vm283_vm0, %v1415_v6 }
  0x17   :  { %1224 = vmatprep.mubr.msk.bf16.mxu0 %vm283_vm0, %v1416_v7 }
  0x1e   :  { %1225 = vmatmul.mubr.msk.bf16.gmra.mrb[8].mxu0 %vm283_vm0, %v1417_v8 }
  0x1f   :  { %1228 = vmatprep.mubr.msk.bf16.mxu0 %vm283_vm0, %v1418_v9 }
  0x20   :  { %14 = vsyncpa [#allocation5], 0  ;;  %v1421_v12 = vld [vmem:[%s1881_s0 + $0x48] sm:$0xff]   ;;  %v1422_v13 = vld [vmem:[%s1881_s0 + $0x50] sm:$0xff]   ;;  %v1493_v35 = vmov 1983009808   ;;  %v739_v37 = vlaneseq }
  0x21   :  { %v1423_v14 = vld [vmem:[%s1881_s0 + $0x58] sm:$0xff]   ;;  %v1424_v15 = vld [vmem:[%s1881_s0 + $0x60] sm:$0xff]   ;;  %v1425_v16 = vld [vmem:[%s1881_s0 + $0x68] sm:$0xff]   ;;  %v737_v36 = vunpack.c.l.s4 %v1493_v35  ;;  %vm1495_vm1 = vmmov 0   ;;  %s1497_s28 = smov [#allocation2]  }
  0x22   :  { %v1426_v17 = vld [vmem:[%s1881_s0 + $0x70] sm:$0xff]   ;;  %v1427_v18 = vld [vmem:[%s1881_s0 + $0x78] sm:$0xff]   ;;  %v1428_v19 = vld [vmem:[%s1881_s0 + $0x80] sm:$0xff]   ;;  %v740_v39 = vshrl.u32 %v739_v37, 7  ;;  %s997_s29 = sshll.u32 %s1497_s28, 4  ;;  %s998_s29 = int_to_ptr.vmem [resolvable:$true] %s997_s29 }
  0x23   :  { %v1429_v20 = vld [vmem:[%s1881_s0 + $0x88] sm:$0xff]   ;;  %v1430_v21 = vld [vmem:[%s1881_s0 + $0x90] sm:$0xff]   ;;  %v1431_v22 = vld [vmem:[%s1881_s0 + $0x98] sm:$0xff]   ;;  %v738_v38 = vunpack.c.0.s8 %v737_v36  ;;  %s1445_s30 = scalar_lea.vmem %s998_s29, 32  ;;  %p1450_p1 = scmp.lt.s32.totalorder %s998_s29, %s998_s29 }
  0x24   :  { %v1432_v23 = vld [vmem:[%s1881_s0 + $0xa0] sm:$0xff]   ;;  %v1433_v24 = vld [vmem:[%s1881_s0 + $0xa8] sm:$0xff]   ;;  %v1434_v25 = vld [vmem:[%s1881_s0 + $0xb0] sm:$0xff]   ;;  %p1446_p0 = scmp.ne.s32.totalorder %s998_s29, %s1445_s30  ;;  %p1451_p2 = scmp.lt.s32.totalorder %s1445_s30, %s1445_s30 }
  0x25   :  { %v1435_v26 = vld [vmem:[%s1881_s0 + $0xb8] sm:$0xff]   ;;  %v1436_v27 = vld [vmem:[%s1881_s0 + $0xc0] sm:$0xff]   ;;  %v1437_v28 = vld [vmem:[%s1881_s0 + $0xc8] sm:$0xff]   ;;  %v741_v40 = vsub.s32 %v738_v38, %v740_v39 }
  0x26   :  { %1229 = vmatmul.mubr.msk.bf16.gmra.mrb[12].mxu0 %vm283_vm0, %v1419_v10  ;;  %v1438_v29 = vld [vmem:[%s1881_s0 + $0xd0] sm:$0xff]   ;;  %v1439_v30 = vld [vmem:[%s1881_s0 + $0xd8] sm:$0xff]   ;;  %v1440_v31 = vld [vmem:[%s1881_s0 + $0xe0] sm:$0xff]   ;;  %p1452_p3 = por %p1451_p2, %p1450_p1 }
  0x27   :  { %1232 = vmatprep.mubr.msk.bf16.mxu0 %vm283_vm0, %v1420_v11  ;;  %v1441_v32 = vld [vmem:[%s1881_s0 + $0xe8] sm:$0xff]   ;;  %v1442_v33 = vld [vmem:[%s1881_s0 + $0xf0] sm:$0xff]   ;;  %v1443_v34 = vld [vmem:[%s1881_s0 + $0xf8] sm:$0xff]  }
  0x28   :  { %v733_v41 = vld [vmem:[%s1884_s3] sm:$0xff]  ;;  %p1453_p4 = pnand %p1452_p3, %p1446_p0 }
  0x29   :  { %v1679_v42 = vrot.slane %v733_v41, %v741_v40  ;;  %v1686_v44 = vld [vmem:[%s1883_s2] ss:$0 sm:$0xff]  ;;  %v735_v48 = vcombine.high %v733_v41, %v733_v41 }
  0x2b   :  { %v750_v43 = vcombine.high %v1679_v42, %v1679_v42  ;;  %v1692_v56 = vrot.slane %v735_v48, %v741_v40 }
  0x2d   :  { %820 = vmatprep.mubr.f32.mxu1 %v750_v43 }
  0x2e   :  { %1233 = vmatmul.mubr.msk.bf16.gmra.mrb[16].mxu0 %vm283_vm0, %v1421_v12 }
  0x2f   :  { %1236 = vmatprep.mubr.msk.bf16.mxu0 %vm283_vm0, %v1422_v13 }
  0x36   :  { %1237 = vmatmul.mubr.msk.bf16.gmra.mrb[20].mxu0 %vm283_vm0, %v1423_v14 }
  0x37   :  { %1240 = vmatprep.mubr.msk.bf16.mxu0 %vm283_vm0, %v1424_v15 }
  0x3e   :  { %1241 = vmatmul.mubr.msk.bf16.gmra.mrb[24].mxu0 %vm283_vm0, %v1425_v16 }
  0x3f   :  { %1244 = vmatprep.mubr.msk.bf16.mxu0 %vm283_vm0, %v1426_v17 }
  0x46   :  { %1245 = vmatmul.mubr.msk.bf16.gmra.mrb[28].mxu0 %vm283_vm0, %v1427_v18 }
  0x47   :  { %1248 = vmatprep.mubr.msk.bf16.mxu0 %vm283_vm0, %v1428_v19 }
  0x4e   :  { %1249 = vmatmul.mubr.msk.bf16.gmra.mrb[32].mxu0 %vm283_vm0, %v1429_v20 }
  0x4f   :  { %1252 = vmatprep.mubr.msk.bf16.mxu0 %vm283_vm0, %v1430_v21 }
  0x56   :  { %1253 = vmatmul.mubr.msk.bf16.gmra.mrb[36].mxu0 %vm283_vm0, %v1431_v22 }
  0x57   :  { %1256 = vmatprep.mubr.msk.bf16.mxu0 %vm283_vm0, %v1432_v23 }
  0x5e   :  { %1257 = vmatmul.mubr.msk.bf16.gmra.mrb[40].mxu0 %vm283_vm0, %v1433_v24 }
  0x5f   :  { %1260 = vmatprep.mubr.msk.bf16.mxu0 %vm283_vm0, %v1434_v25 }
  0x66   :  { %1261 = vmatmul.mubr.msk.bf16.gmra.mrb[44].mxu0 %vm283_vm0, %v1435_v26 }
  0x67   :  { %1264 = vmatprep.mubr.msk.bf16.mxu0 %vm283_vm0, %v1436_v27 }
  0x6e   :  { %1265 = vmatmul.mubr.msk.bf16.gmra.mrb[48].mxu0 %vm283_vm0, %v1437_v28 }
  0x6f   :  { %1268 = vmatprep.mubr.msk.bf16.mxu0 %vm283_vm0, %v1438_v29 }
  0x76   :  { %1269 = vmatmul.mubr.msk.bf16.gmra.mrb[52].mxu0 %vm283_vm0, %v1439_v30 }
  0x77   :  { %1272 = vmatprep.mubr.msk.bf16.mxu0 %vm283_vm0, %v1440_v31 }
  0x7e   :  { %1273 = vmatmul.mubr.msk.bf16.gmra.mrb[56].mxu0 %vm283_vm0, %v1441_v32 }
  0x7f   :  { %1276 = vmatprep.mubr.msk.bf16.mxu0 %vm283_vm0, %v1442_v33 }
  0x86   :  { %1277 = vmatmul.mubr.msk.bf16.gmra.mrb[60].mxu0 %vm283_vm0, %v1443_v34 }
  0xe1   :  { %v1218_v45 = vpop.f32.mrb[0].mxu0 }
  0xe2   :  { %v423_v46 = vadd.f32 %v1218_v45, %v1686_v44  ;;  %v414_v47 = vpop.f32.mrb[1].mxu0 }
  0xe3   :  { %v415_v49 = vadd.f32 %v1686_v44, %v414_v47  ;;  %v1219_v50 = vpop.f32.mrb[2].mxu0 }
  0xe4   :  { %v426_v51 = vadd.f32 %v1219_v50, %v1686_v44  ;;  %v417_v52 = vpop.f32.mrb[3].mxu0  ;;  %v671_v54 = vmax.f32 %v423_v46, 0.0 }
  0xe5   :  { %v418_v53 = vadd.f32 %v1686_v44, %v417_v52  ;;  %v669_v57 = vmax.f32 %v415_v49, 0.0 }
  0xe6   :  { %v672_v55 = vmax.f32 %v426_v51, 0.0 }
  0xe7   :  { %v670_v58 = vmax.f32 %v418_v53, 0.0 }
  0xe8   :  { %v1694_v59 = vpack.c.bf16 %v672_v55, %v671_v54 }
  0xe9   :  { %v1222_v60 = vpop.f32.mrb[4].mxu0  ;;  %v1696_v61 = vpack.c.bf16 %v670_v58, %v669_v57 }
  0xea   :  { %v439_v62 = vadd.f32 %v1222_v60, %v1686_v44  ;;  %v430_v63 = vpop.f32.mrb[5].mxu0 }
  0xeb   :  { %v431_v0 = vadd.f32 %v1686_v44, %v430_v63  ;;  %v1223_v1 = vpop.f32.mrb[6].mxu0 }
  0xec   :  { %v442_v2 = vadd.f32 %v1223_v1, %v1686_v44  ;;  %v433_v3 = vpop.f32.mrb[7].mxu0  ;;  %v675_v5 = vmax.f32 %v439_v62, 0.0 }
  0xed   :  { %v434_v4 = vadd.f32 %v1686_v44, %v433_v3  ;;  %v673_v7 = vmax.f32 %v431_v0, 0.0 }
  0xee   :  { %v676_v6 = vmax.f32 %v442_v2, 0.0 }
  0xef   :  { %v674_v8 = vmax.f32 %v434_v4, 0.0 }
  0xf0   :  { %v1702_v9 = vpack.c.bf16 %v676_v6, %v675_v5 }
  0xf1   :  { %v1704_v10 = vpack.c.bf16 %v674_v8, %v673_v7  ;;  %v1226_v11 = vpop.f32.mrb[8].mxu0 }
  0xf2   :  { %v455_v12 = vadd.f32 %v1226_v11, %v1686_v44  ;;  %v446_v13 = vpop.f32.mrb[9].mxu0 }
  0xf3   :  { %v447_v14 = vadd.f32 %v1686_v44, %v446_v13  ;;  %v1227_v15 = vpop.f32.mrb[10].mxu0 }
  0xf4   :  { %v458_v16 = vadd.f32 %v1227_v15, %v1686_v44  ;;  %v449_v17 = vpop.f32.mrb[11].mxu0  ;;  %v679_v19 = vmax.f32 %v455_v12, 0.0 }
  0xf5   :  { %v450_v18 = vadd.f32 %v1686_v44, %v449_v17  ;;  %v677_v21 = vmax.f32 %v447_v14, 0.0 }
  0xf6   :  { %v680_v20 = vmax.f32 %v458_v16, 0.0 }
  0xf7   :  { %v678_v22 = vmax.f32 %v450_v18, 0.0 }
  0xf8   :  { %v1710_v23 = vpack.c.bf16 %v680_v20, %v679_v19 }
  0xf9   :  { %v1712_v24 = vpack.c.bf16 %v678_v22, %v677_v21  ;;  %v1230_v25 = vpop.f32.mrb[12].mxu0 }
  0xfa   :  { %v471_v26 = vadd.f32 %v1230_v25, %v1686_v44  ;;  %v462_v27 = vpop.f32.mrb[13].mxu0 }
  0xfb   :  { %v463_v28 = vadd.f32 %v1686_v44, %v462_v27  ;;  %v1231_v29 = vpop.f32.mrb[14].mxu0 }
  0xfc   :  { %v474_v30 = vadd.f32 %v1231_v29, %v1686_v44  ;;  %v465_v31 = vpop.f32.mrb[15].mxu0  ;;  %v683_v33 = vmax.f32 %v471_v26, 0.0 }
  0xfd   :  { %v466_v32 = vadd.f32 %v1686_v44, %v465_v31  ;;  %v681_v35 = vmax.f32 %v463_v28, 0.0 }
  0xfe   :  { %v684_v34 = vmax.f32 %v474_v30, 0.0 }
  0xff   :  { %v682_v36 = vmax.f32 %v466_v32, 0.0 }
 0x100   :  { %v1718_v37 = vpack.c.bf16 %v684_v34, %v683_v33 }
 0x101   :  { %v1720_v38 = vpack.c.bf16 %v682_v36, %v681_v35  ;;  %v1234_v39 = vpop.f32.mrb[16].mxu0 }
 0x102   :  { %v487_v40 = vadd.f32 %v1234_v39, %v1686_v44  ;;  %v478_v41 = vpop.f32.mrb[17].mxu0 }
 0x103   :  { %v479_v43 = vadd.f32 %v1686_v44, %v478_v41  ;;  %v1235_v45 = vpop.f32.mrb[18].mxu0 }
 0x104   :  { %v490_v46 = vadd.f32 %v1235_v45, %v1686_v44  ;;  %v481_v47 = vpop.f32.mrb[19].mxu0  ;;  %v687_v49 = vmax.f32 %v487_v40, 0.0 }
 0x105   :  { %v482_v48 = vadd.f32 %v1686_v44, %v481_v47  ;;  %v685_v51 = vmax.f32 %v479_v43, 0.0 }
 0x106   :  { %v688_v50 = vmax.f32 %v490_v46, 0.0 }
 0x107   :  { %v686_v52 = vmax.f32 %v482_v48, 0.0 }
 0x108   :  { %v1319_v53 = vpack.c.bf16 %v688_v50, %v687_v49 }
 0x109   :  { %v1238_v54 = vpop.f32.mrb[20].mxu0  ;;  %v1315_v55 = vpack.c.bf16 %v686_v52, %v685_v51  ;;  %v751_v51 = vcombine.high %v1692_v56, %v1692_v56 }
 0x10a   :  { %v503_v57 = vadd.f32 %v1238_v54, %v1686_v44  ;;  %v494_v58 = vpop.f32.mrb[21].mxu0 }
 0x10b   :  { %v495_v60 = vadd.f32 %v1686_v44, %v494_v58  ;;  %v1239_v62 = vpop.f32.mrb[22].mxu0  ;;  %1316 = vmatprep.subr.bf16.mxu1 %v1315_v55 }
 0x10c   :  { %v506_v63 = vadd.f32 %v1239_v62, %v1686_v44  ;;  %v497_v0 = vpop.f32.mrb[23].mxu0  ;;  %1318 = vmatpush3.bf16.msra.mxu1 %v1696_v61  ;;  %v691_v2 = vmax.f32 %v503_v57, 0.0 }
 0x10d   :  { %v498_v1 = vadd.f32 %v1686_v44, %v497_v0  ;;  %1320 = vmatprep.subr.bf16.mxu1 %v1319_v53  ;;  %v689_v4 = vmax.f32 %v495_v60, 0.0 }
 0x10e   :  { %v692_v3 = vmax.f32 %v506_v63, 0.0 }
 0x10f   :  { %v690_v5 = vmax.f32 %v498_v1, 0.0 }
 0x110   :  { %v1327_v6 = vpack.c.bf16 %v692_v3, %v691_v2  ;;  %1322 = vmatpush3.bf16.msra.mxu1 %v1694_v59 }
 0x111   :  { %v1323_v7 = vpack.c.bf16 %v690_v5, %v689_v4  ;;  %v1242_v8 = vpop.f32.mrb[24].mxu0 }
 0x112   :  { %v519_v11 = vadd.f32 %v1242_v8, %v1686_v44  ;;  %v510_v12 = vpop.f32.mrb[25].mxu0 }
 0x113   :  { %v511_v13 = vadd.f32 %v1686_v44, %v510_v12  ;;  %v1243_v14 = vpop.f32.mrb[26].mxu0  ;;  %1324 = vmatprep.subr.bf16.mxu1 %v1323_v7 }
 0x114   :  { %v522_v61 = vadd.f32 %v1243_v14, %v1686_v44  ;;  %v513_v15 = vpop.f32.mrb[27].mxu0  ;;  %1326 = vmatpush3.bf16.msra.mxu1 %v1704_v10  ;;  %v695_v17 = vmax.f32 %v519_v11, 0.0 }
 0x115   :  { %v514_v16 = vadd.f32 %v1686_v44, %v513_v15  ;;  %1328 = vmatprep.subr.bf16.mxu1 %v1327_v6  ;;  %v693_v59 = vmax.f32 %v511_v13, 0.0 }
 0x116   :  { %v696_v18 = vmax.f32 %v522_v61, 0.0 }
 0x117   :  { %v694_v19 = vmax.f32 %v514_v16, 0.0 }
 0x118   :  { %v1335_v20 = vpack.c.bf16 %v696_v18, %v695_v17  ;;  %1330 = vmatpush3.bf16.msra.mxu1 %v1702_v9 }
 0x119   :  { %v1331_v21 = vpack.c.bf16 %v694_v19, %v693_v59  ;;  %v1246_v22 = vpop.f32.mrb[28].mxu0 }
 0x11a   :  { %v535_v25 = vadd.f32 %v1246_v22, %v1686_v44  ;;  %v526_v26 = vpop.f32.mrb[29].mxu0 }
 0x11b   :  { %v527_v27 = vadd.f32 %v1686_v44, %v526_v26  ;;  %v1247_v28 = vpop.f32.mrb[30].mxu0  ;;  %1332 = vmatprep.subr.bf16.mxu1 %v1331_v21 }
 0x11c   :  { %v538_v10 = vadd.f32 %v1247_v28, %v1686_v44  ;;  %v529_v29 = vpop.f32.mrb[31].mxu0  ;;  %1334 = vmatpush3.bf16.msra.mxu1 %v1712_v24  ;;  %v699_v31 = vmax.f32 %v535_v25, 0.0 }
 0x11d   :  { %v530_v30 = vadd.f32 %v1686_v44, %v529_v29  ;;  %1336 = vmatprep.subr.bf16.mxu1 %v1335_v20  ;;  %v697_v9 = vmax.f32 %v527_v27, 0.0 }
 0x11e   :  { %v700_v32 = vmax.f32 %v538_v10, 0.0 }
 0x11f   :  { %v698_v33 = vmax.f32 %v530_v30, 0.0 }
 0x120   :  { %v1343_v34 = vpack.c.bf16 %v700_v32, %v699_v31  ;;  %1338 = vmatpush3.bf16.msra.mxu1 %v1710_v23 }
 0x121   :  { %v1339_v35 = vpack.c.bf16 %v698_v33, %v697_v9  ;;  %v1250_v36 = vpop.f32.mrb[32].mxu0 }
 0x122   :  { %v551_v39 = vadd.f32 %v1250_v36, %v1686_v44  ;;  %v542_v40 = vpop.f32.mrb[33].mxu0 }
 0x123   :  { %v543_v41 = vadd.f32 %v1686_v44, %v542_v40  ;;  %v1251_v43 = vpop.f32.mrb[34].mxu0  ;;  %1340 = vmatprep.subr.bf16.mxu1 %v1339_v35 }
 0x124   :  { %v554_v24 = vadd.f32 %v1251_v43, %v1686_v44  ;;  %v545_v45 = vpop.f32.mrb[35].mxu0  ;;  %1342 = vmatpush3.bf16.msra.mxu1 %v1720_v38  ;;  %v703_v47 = vmax.f32 %v551_v39, 0.0 }
 0x125   :  { %v546_v46 = vadd.f32 %v1686_v44, %v545_v45  ;;  %1344 = vmatprep.subr.bf16.mxu1 %v1343_v34  ;;  %v701_v23 = vmax.f32 %v543_v41, 0.0 }
 0x126   :  { %v704_v48 = vmax.f32 %v554_v24, 0.0 }
 0x127   :  { %v702_v49 = vmax.f32 %v546_v46, 0.0 }
 0x128   :  { %v1749_v50 = vpack.c.bf16 %v704_v48, %v703_v47  ;;  %1346 = vmatpush3.bf16.msra.mxu1 %v1718_v37 }
 0x129   :  { %v1754_v52 = vpack.c.bf16 %v702_v49, %v701_v23  ;;  %v1254_v53 = vpop.f32.mrb[36].mxu0 }
 0x12a   :  { %v567_v54 = vadd.f32 %v1254_v53, %v1686_v44  ;;  %v558_v38 = vpop.f32.mrb[37].mxu0 }
 0x12b   :  { %v559_v55 = vadd.f32 %v1686_v44, %v558_v38  ;;  %v1255_v57 = vpop.f32.mrb[38].mxu0  ;;  %821 = vmatmul.mubr.f32.vlgmr.msra.gmra.mrb[0].mxu1 %v1679_v42 }
 0x12c   :  { %v570_v58 = vadd.f32 %v1255_v57, %v1686_v44  ;;  %v561_v60 = vpop.f32.mrb[39].mxu0  ;;  %890 = vmatprep.mubr.f32.mxu1 %v751_v51  ;;  %v707_v62 = vmax.f32 %v567_v54, 0.0 }
 0x12d   :  { %v562_v37 = vadd.f32 %v1686_v44, %v561_v60  ;;  %v705_v0 = vmax.f32 %v559_v55, 0.0 }
 0x12e   :  { %v708_v63 = vmax.f32 %v570_v58, 0.0 }
 0x12f   :  { %v706_v1 = vmax.f32 %v562_v37, 0.0 }
 0x130   :  { %v1761_v2 = vpack.c.bf16 %v708_v63, %v707_v62 }
 0x131   :  { %v1763_v3 = vpack.c.bf16 %v706_v1, %v705_v0  ;;  %v1258_v4 = vpop.f32.mrb[40].mxu0 }
 0x132   :  { %v583_v5 = vadd.f32 %v1258_v4, %v1686_v44  ;;  %v574_v6 = vpop.f32.mrb[41].mxu0 }
 0x133   :  { %v575_v42 = vadd.f32 %v1686_v44, %v574_v6  ;;  %v1259_v7 = vpop.f32.mrb[42].mxu0 }
 0x134   :  { %v586_v8 = vadd.f32 %v1259_v7, %v1686_v44  ;;  %v577_v11 = vpop.f32.mrb[43].mxu0  ;;  %v711_v13 = vmax.f32 %v583_v5, 0.0 }
 0x135   :  { %v578_v12 = vadd.f32 %v1686_v44, %v577_v11  ;;  %v709_v61 = vmax.f32 %v575_v42, 0.0 }
 0x136   :  { %v712_v14 = vmax.f32 %v586_v8, 0.0 }
 0x137   :  { %v710_v15 = vmax.f32 %v578_v12, 0.0 }
 0x138   :  { %v1769_v16 = vpack.c.bf16 %v712_v14, %v711_v13 }
 0x139   :  { %v1771_v17 = vpack.c.bf16 %v710_v15, %v709_v61  ;;  %v1262_v18 = vpop.f32.mrb[44].mxu0 }
 0x13a   :  { %v599_v59 = vadd.f32 %v1262_v18, %v1686_v44  ;;  %v590_v19 = vpop.f32.mrb[45].mxu0 }
 0x13b   :  { %v591_v20 = vadd.f32 %v1686_v44, %v590_v19  ;;  %v1263_v21 = vpop.f32.mrb[46].mxu0 }
 0x13c   :  { %v602_v22 = vadd.f32 %v1263_v21, %v1686_v44  ;;  %v593_v25 = vpop.f32.mrb[47].mxu0  ;;  %v715_v27 = vmax.f32 %v599_v59, 0.0 }
 0x13d   :  { %v594_v26 = vadd.f32 %v1686_v44, %v593_v25  ;;  %v713_v10 = vmax.f32 %v591_v20, 0.0 }
 0x13e   :  { %v716_v28 = vmax.f32 %v602_v22, 0.0 }
 0x13f   :  { %v714_v29 = vmax.f32 %v594_v26, 0.0 }
 0x140   :  { %v1777_v30 = vpack.c.bf16 %v716_v28, %v715_v27 }
 0x141   :  { %v1779_v31 = vpack.c.bf16 %v714_v29, %v713_v10  ;;  %v1266_v32 = vpop.f32.mrb[48].mxu0  ;;  %v1494_v10 = vmov 0.0|0.0  }
 0x142   :  { %v615_v9 = vadd.f32 %v1266_v32, %v1686_v44  ;;  %v606_v33 = vpop.f32.mrb[49].mxu0  ;;  %v902_v32 = vld [vmem:[%s1885_s4 + $0x28] sm:$0xff] }
 0x143   :  { %v607_v34 = vadd.f32 %v1686_v44, %v606_v33  ;;  %v1267_v35 = vpop.f32.mrb[50].mxu0  ;;  %v903_v33 = vld [vmem:[%s1885_s4 + $0x30] sm:$0xff] }
 0x144   :  { %v618_v36 = vadd.f32 %v1267_v35, %v1686_v44  ;;  %v609_v39 = vpop.f32.mrb[51].mxu0  ;;  %v719_v41 = vmax.f32 %v615_v9, 0.0 }
 0x145   :  { %v610_v40 = vadd.f32 %v1686_v44, %v609_v39  ;;  %v717_v24 = vmax.f32 %v607_v34, 0.0  ;;  %v904_v34 = vld [vmem:[%s1885_s4 + $0x38] sm:$0xff]  ;;  %v906_v39 = vld [vmem:[%s1885_s4 + $0x48] sm:$0xff] }
 0x146   :  { %v720_v43 = vmax.f32 %v618_v36, 0.0  ;;  %v1389_v35 = vpack.c.bf16 %v904_v34, %v903_v33  ;;  %v905_v36 = vld [vmem:[%s1885_s4 + $0x40] sm:$0xff] }
 0x147   :  { %v718_v45 = vmax.f32 %v610_v40, 0.0  ;;  %v1392_v40 = vpack.c.bf16 %v906_v39, %v905_v36 }
 0x148   :  { %v1351_v46 = vpack.c.bf16 %v720_v43, %v719_v41  ;;  %v907_v41 = vld [vmem:[%s1885_s4 + $0x50] sm:$0xff]  ;;  %v908_v43 = vld [vmem:[%s1885_s4 + $0x58] sm:$0xff] }
 0x149   :  { %v1347_v47 = vpack.c.bf16 %v718_v45, %v717_v24  ;;  %v1270_v48 = vpop.f32.mrb[52].mxu0  ;;  %v1395_v24 = vpack.c.bf16 %v908_v43, %v907_v41  ;;  %v909_v45 = vld [vmem:[%s1885_s4 + $0x60] sm:$0xff] }
 0x14a   :  { %v631_v23 = vadd.f32 %v1270_v48, %v1686_v44  ;;  %v622_v49 = vpop.f32.mrb[53].mxu0  ;;  %v911_v48 = vld [vmem:[%s1885_s4 + $0x70] sm:$0xff] }
 0x14b   :  { %v623_v51 = vadd.f32 %v1686_v44, %v622_v49  ;;  %v1271_v53 = vpop.f32.mrb[54].mxu0  ;;  %1348 = vmatprep.subr.bf16.mxu1 %v1347_v47 }
 0x14c   :  { %v634_v54 = vadd.f32 %v1271_v53, %v1686_v44  ;;  %v625_v38 = vpop.f32.mrb[55].mxu0  ;;  %1350 = vmatpush3.bf16.msra.mxu1 %v1754_v52  ;;  %v723_v57 = vmax.f32 %v631_v23, 0.0  ;;  %v912_v23 = vld [vmem:[%s1885_s4 + $0x78] sm:$0xff] }
 0x14d   :  { %v626_v55 = vadd.f32 %v1686_v44, %v625_v38  ;;  %1352 = vmatprep.subr.bf16.mxu1 %v1351_v46  ;;  %v721_v60 = vmax.f32 %v623_v51, 0.0  ;;  %v910_v46 = vld [vmem:[%s1885_s4 + $0x68] sm:$0xff]  ;;  %v1401_v49 = vpack.c.bf16 %v912_v23, %v911_v48  ;;  %v1496_v51 = vmov 0.0  }
 0x14e   :  { %v724_v58 = vmax.f32 %v634_v54, 0.0  ;;  %v1398_v47 = vpack.c.bf16 %v910_v46, %v909_v45 }
 0x14f   :  { %v722_v37 = vmax.f32 %v626_v55, 0.0 }
 0x150   :  { %v1359_v62 = vpack.c.bf16 %v724_v58, %v723_v57  ;;  %1354 = vmatpush3.bf16.msra.mxu1 %v1749_v50 }
 0x151   :  { %v1355_v63 = vpack.c.bf16 %v722_v37, %v721_v60  ;;  %v1274_v0 = vpop.f32.mrb[56].mxu0 }
 0x152   :  { %v647_v1 = vadd.f32 %v1274_v0, %v1686_v44  ;;  %v638_v4 = vpop.f32.mrb[57].mxu0 }
 0x153   :  { %v639_v5 = vadd.f32 %v1686_v44, %v638_v4  ;;  %v1275_v6 = vpop.f32.mrb[58].mxu0  ;;  %1356 = vmatprep.subr.bf16.mxu1 %v1355_v63 }
 0x154   :  { %v650_v52 = vadd.f32 %v1275_v6, %v1686_v44  ;;  %v641_v42 = vpop.f32.mrb[59].mxu0  ;;  %1358 = vmatpush3.bf16.msra.mxu1 %v1763_v3  ;;  %v727_v8 = vmax.f32 %v647_v1, 0.0 }
 0x155   :  { %v642_v7 = vadd.f32 %v1686_v44, %v641_v42  ;;  %1360 = vmatprep.subr.bf16.mxu1 %v1359_v62  ;;  %v725_v50 = vmax.f32 %v639_v5, 0.0 }
 0x156   :  { %v728_v11 = vmax.f32 %v650_v52, 0.0 }
 0x157   :  { %v726_v12 = vmax.f32 %v642_v7, 0.0 }
 0x158   :  { %v1367_v13 = vpack.c.bf16 %v728_v11, %v727_v8  ;;  %1362 = vmatpush3.bf16.msra.mxu1 %v1761_v2 }
 0x159   :  { %v1363_v14 = vpack.c.bf16 %v726_v12, %v725_v50  ;;  %v1278_v61 = vpop.f32.mrb[60].mxu0 }
 0x15a   :  { %v663_v15 = vadd.f32 %v1278_v61, %v1686_v44  ;;  %v654_v18 = vpop.f32.mrb[61].mxu0 }
 0x15b   :  { %v655_v59 = vadd.f32 %v1686_v44, %v654_v18  ;;  %v1279_v19 = vpop.f32.mrb[62].mxu0  ;;  %1364 = vmatprep.subr.bf16.mxu1 %v1363_v14 }
 0x15c   :  { %v666_v3 = vadd.f32 %v1279_v19, %v1686_v44  ;;  %v657_v20 = vpop.f32.mrb[63].mxu0  ;;  %1366 = vmatpush3.bf16.msra.mxu1 %v1771_v17  ;;  %v731_v22 = vmax.f32 %v663_v15, 0.0  ;;  %v898_v17 = vld [vmem:[%s1885_s4 + $0x8] sm:$0xff] }
 0x15d   :  { %v658_v21 = vadd.f32 %v1686_v44, %v657_v20  ;;  %1368 = vmatprep.subr.bf16.mxu1 %v1367_v13  ;;  %v729_v2 = vmax.f32 %v655_v59, 0.0  ;;  %v897_v44 = vld [vmem:[%s1885_s4] sm:$0xff] }
 0x15e   :  { %v732_v25 = vmax.f32 %v666_v3, 0.0  ;;  %v1380_v29 = vpack.c.bf16 %v898_v17, %v897_v44 }
 0x15f   :  { %v730_v26 = vmax.f32 %v658_v21, 0.0 }
 0x160   :  { %v1375_v27 = vpack.c.bf16 %v732_v25, %v731_v22  ;;  %1370 = vmatpush3.bf16.msra.mxu1 %v1769_v16  ;;  %v899_v16 = vld [vmem:[%s1885_s4 + $0x10] sm:$0xff] }
 0x161   :  { %v1371_v28 = vpack.c.bf16 %v730_v26, %v729_v2 }
 0x163   :  { %1372 = vmatprep.subr.bf16.mxu1 %v1371_v28 }
 0x164   :  { %1374 = vmatpush3.bf16.msra.mxu1 %v1779_v31  ;;  %v901_v31 = vld [vmem:[%s1885_s4 + $0x20] sm:$0xff] }
 0x165   :  { %1376 = vmatprep.subr.bf16.mxu1 %v1375_v27  ;;  %v1386_v9 = vpack.c.bf16 %v902_v32, %v901_v31 }
 0x168   :  { %1378 = vmatpush3.bf16.msra.mxu1 %v1777_v30  ;;  %v900_v30 = vld [vmem:[%s1885_s4 + $0x18] sm:$0xff] }
 0x169   :  { %1379 = vmatprep.subr.bf16.mxu1 %v1494_v10 }
 0x16b   :  { %891 = vmatmul.mubr.f32.vlgmr.msra.gmra.mrb[2].mxu1 %v1692_v56  ;;  %v1383_v56 = vpack.c.bf16 %v900_v30, %v899_v16 }
 0x16c   :  { %1381 = vmatpush3.bf16.msra.mxu1 %v1380_v29  ;;  %1312 = vmatprep.mubr.msk.f32.mxu1 %vm1495_vm1, %v1496_v51 }
 0x16d   :  { %1382 = vmatprep.subr.bf16.mxu1 %v1494_v10 }
 0x170   :  { %1384 = vmatpush3.bf16.msra.mxu1 %v1383_v56 }
 0x171   :  { %1385 = vmatprep.subr.bf16.mxu1 %v1494_v10 }
 0x174   :  { %1387 = vmatpush3.bf16.msra.mxu1 %v1386_v9 }
 0x175   :  { %1388 = vmatprep.subr.bf16.mxu1 %v1494_v10 }
 0x178   :  { %1390 = vmatpush3.bf16.msra.mxu1 %v1389_v35 }
 0x179   :  { %1391 = vmatprep.subr.bf16.mxu1 %v1494_v10 }
 0x17c   :  { %1393 = vmatpush3.bf16.msra.mxu1 %v1392_v40 }
 0x17d   :  { %1394 = vmatprep.subr.bf16.mxu1 %v1494_v10 }
 0x180   :  { %1396 = vmatpush3.bf16.msra.mxu1 %v1395_v24 }
 0x181   :  { %1397 = vmatprep.subr.bf16.mxu1 %v1494_v10 }
 0x184   :  { %1399 = vmatpush3.bf16.msra.mxu1 %v1398_v47 }
 0x185   :  { %1400 = vmatprep.subr.bf16.mxu1 %v1494_v10 }
 0x188   :  { %1402 = vmatpush3.bf16.msra.mxu1 %v1401_v49 }
 0x1fe   :  { %v1155_v53 = vpop.f32.mrb[0].mxu1 }
 0x1ff   :  { %v1156_v54 = vpop.f32.mrb[1].mxu1 }
 0x200   :  { %v1157_v38 = vadd.f32 %v1156_v54, %v1155_v53 }
 0x23e   :  { %v1190_v55 = vpop.f32.mrb[2].mxu1 }
 0x23f   :  { %v1191_v57 = vpop.f32.mrb[3].mxu1 }
 0x240   :  { %v1192_v58 = vadd.f32 %v1191_v57, %v1190_v55 }
 0x242   :  { %v893_v60 = vadd.f32 %v1192_v58, %v1157_v38 }
 0x244   :  { %896 = vst [vmem:[#allocation2] sm:$0x3] %v893_v60  ;;  %1313 = vmatmul.mubr.f32.vlgmr.msra.gmra.mrb[4].mxu1 %v893_v60 }
 0x245   :  { %1456 = shalt.err (!%p1453_p4)
}
 0x246   :  { %s1457_s9 = scalar_lea.hbm %s1887_s6, 32 }
 0x247   :  { %p1458_p5 = scmp.ne.s32.totalorder %s1887_s6, %s1457_s9  ;;  %p1461_p6 = scmp.lt.u32.totalorder %s1457_s9, %s1887_s6 }
 0x249   :  { %p1463_p7 = pnand %p1461_p6, %p1458_p5 }
 0x24b   :  { %1466 = shalt.err (!%p1463_p7)
}
 0x24c   :  { %1000 = dma.vmem_to_hbm [thread:$0]  %s998_s29, 32, %s1887_s6, [#allocation3]   ;;  %v1087_v37 = vld [vmem:[%s1886_s5] ss:$0 sm:$0xff] }
 0x24d   :  { %s1498_s17 = smov [#allocation4]  }
 0x24e   :  { %s1007_s18 = sshll.u32 %s1498_s17, 4  ;;  %s1008_s18 = int_to_ptr.vmem [resolvable:$true] %s1007_s18 }
 0x24f   :  { %s1467_s19 = scalar_lea.vmem %s1008_s18, 32  ;;  %p1472_p9 = scmp.lt.s32.totalorder %s1008_s18, %s1008_s18 }
 0x250   :  { %p1468_p8 = scmp.ne.s32.totalorder %s1008_s18, %s1467_s19  ;;  %p1473_p10 = scmp.lt.s32.totalorder %s1467_s19, %s1467_s19 }
 0x252   :  { %p1474_p11 = por %p1473_p10, %p1472_p9 }
 0x254   :  { %p1475_p12 = pnand %p1474_p11, %p1468_p8 }
 0x317   :  { %v986_v62 = vpop.f32.mrb[4].mxu1 }
 0x318   :  { %v987_v63 = vadd.f32 %v1087_v37, %v986_v62  ;;  %v1314_v0 = vpop.f32.mrb[5].mxu1 }
 0x31a   :  { %990 = vst [vmem:[#allocation4] sm:$0x3] %v987_v63 }
 0x31b   :  { %1478 = shalt.err (!%p1475_p12)
}
 0x31c   :  { %s1479_s21 = scalar_lea.hbm %s1888_s7, 32 }
 0x31d   :  { %p1480_p13 = scmp.ne.s32.totalorder %s1888_s7, %s1479_s21  ;;  %p1483_p0 = scmp.lt.u32.totalorder %s1479_s21, %s1888_s7 }
 0x31f   :  { %p1485_p1 = pnand %p1483_p0, %p1480_p13 }
 0x321   :  { %1488 = shalt.err (!%p1485_p1)
}
 0x322   :  { %1010 = dma.vmem_to_hbm [thread:$0]  %s1008_s18, 32, %s1888_s7, [#allocation5]  }
 0x323   :  { %1489 = dma.done.wait [#allocation3], 32  }
 0x324   :  { %1490 = vsyncadd [#allocation3], 4294967264 }
 0x325   :  { %1491 = dma.done.wait [#allocation5], 32  }
 0x326   :  { %1492 = vsyncadd [#allocation5], 4294967264 }
 0x327   :  { %1017 = vsyncpa [#allocation3], 1 }
 0x328   :  { %1018 = vsyncpa [#allocation5], 1 }

</bundles_post_ra>
